<compile_context>
chip_gen: v7x
topology: tpu7x:2x2x1
jax: 0.10.0
libtpu: 0.0.40
codegen_flags: <defaults>
</compile_context>

<pallas_src>
import functools

import jax
import jax.numpy as jnp
from jax.experimental import pallas as pl
from jax.experimental.pallas import tpu as pltpu

EPS = 1e-5

# Per-block byte budget (one buffer). With ~2x double-buffering of input and
# output this keeps total pipeline VMEM ~<= 16 MiB, safe on v5e/v6e/v7x.
_BLOCK_BYTES_BUDGET = 4 << 20


def _switchnorm_kernel(mw_ref, vw_ref, w_ref, b_ref, x_ref, o_ref, *, hw):
    # x block: (B_TILE, C, HW_pad). Zero padding along HW contributes nothing
    # to the s1/s2 sums; statistics use the real `hw`.
    x = x_ref[...].astype(jnp.float32)                 # (B, C, HWp)
    inv_hw = 1.0 / hw

    # one-pass moments
    s1 = jnp.sum(x, axis=-1, keepdims=True)            # (B, C, 1)
    s2 = jnp.sum(x * x, axis=-1, keepdims=True)        # (B, C, 1)
    mean_in = s1 * inv_hw
    # PyTorch Tensor.var defaults to unbiased (divide by HW-1)
    var_in = (s2 - s1 * mean_in) / (hw - 1)

    # layer-norm stats derived from instance stats (matches reference math)
    mean_ln = jnp.mean(mean_in, axis=1, keepdims=True)          # (B, 1, 1)
    temp = var_in + mean_in * mean_in
    var_ln = jnp.mean(temp, axis=1, keepdims=True) - mean_ln * mean_ln

    # softmax-ed switch weights (precomputed in wrapper), scalar SMEM reads
    mw0 = mw_ref[0]
    mw1 = mw_ref[1]
    vw0 = vw_ref[0]
    vw1 = vw_ref[1]

    mean = mw0 * mean_in + mw1 * mean_ln               # (B, C, 1)
    var = vw0 * var_in + vw1 * var_ln                  # (B, C, 1)

    # fuse normalization + affine into a single per-channel scale/shift FMA
    inv = jax.lax.rsqrt(var + EPS)                     # tiny -> EUP slot
    scale = w_ref[...] * inv                           # (1,C,1)*(B,C,1)->(B,C,1)
    shift = b_ref[...] - mean * scale                  # (B, C, 1)
    o_ref[...] = (x * scale + shift).astype(o_ref.dtype)


def _pick_b_tile(n, block_bytes_per_sample):
    """Largest divisor of n fitting the VMEM budget, keeping >=2 grid steps."""
    max_tile = max(1, n // 2) if n > 1 else 1
    best = 1
    for bt in range(1, max_tile + 1):
        if n % bt == 0 and bt * block_bytes_per_sample <= _BLOCK_BYTES_BUDGET:
            best = bt
    return best


def switch_norm(x, weight, bias, mean_weight, var_weight):
    """x: (N, C, H, W). weight/bias: (C,). mean/var_weight: (2,)."""
    N, C, H, W = x.shape
    HW = H * W
    out_dtype = x.dtype

    # pad spatial dim to a multiple of 128 so output stores are lane-dense
    HW_pad = ((HW + 127) // 128) * 128
    x3 = x.reshape(N, C, HW)
    if HW_pad != HW:
        x3 = jnp.pad(x3, ((0, 0), (0, 0), (0, HW_pad - HW)))

    bytes_per_sample = C * HW_pad * 4
    B_TILE = _pick_b_tile(N, bytes_per_sample)
    # TODO(synk): for single samples larger than the VMEM budget (e.g. huge
    # C*HW on v7x's 64 MiB VMEM) add an HW-chunked two-pass fallback.
    grid = (N // B_TILE,)

    block_bytes = B_TILE * bytes_per_sample
    vmem_limit = min(48 << 20, max(32 << 20, 4 * block_bytes + (4 << 20)))

    # softmax over the 2-element switch weights (tiny -> plain JAX glue)
    mw = jax.nn.softmax(mean_weight.astype(jnp.float32))
    vw = jax.nn.softmax(var_weight.astype(jnp.float32))
    w3 = weight.astype(jnp.float32).reshape(1, C, 1)
    b3 = bias.astype(jnp.float32).reshape(1, C, 1)

    cost = pl.CostEstimate(
        flops=6 * N * C * HW,
        transcendentals=N * C,
        bytes_accessed=2 * N * C * HW * x.dtype.itemsize,
    )

    out = pl.pallas_call(
        functools.partial(_switchnorm_kernel, hw=HW),
        out_shape=jax.ShapeDtypeStruct((N, C, HW_pad), out_dtype),
        grid=grid,
        in_specs=[
            pl.BlockSpec(memory_space=pltpu.MemorySpace.SMEM),   # mean_weight (softmaxed)
            pl.BlockSpec(memory_space=pltpu.MemorySpace.SMEM),   # var_weight  (softmaxed)
            pl.BlockSpec((1, C, 1), lambda n: (0, 0, 0)),        # weight
            pl.BlockSpec((1, C, 1), lambda n: (0, 0, 0)),        # bias
            pl.BlockSpec((B_TILE, C, HW_pad), lambda n: (n, 0, 0)),  # x
        ],
        out_specs=pl.BlockSpec((B_TILE, C, HW_pad), lambda n: (n, 0, 0)),
        compiler_params=pltpu.CompilerParams(
            dimension_semantics=("parallel",),
            vmem_limit_bytes=vmem_limit,
        ),
        cost_estimate=cost,
    )(mw, vw, w3, b3, x3)

    if HW_pad != HW:
        out = out[:, :, :HW]
    return out.reshape(N, C, H, W)


def _reference(x, weight, bias, mean_weight, var_weight):
    # pure-JAX reference mirroring the PyTorch forward (using_bn=False)
    N, C, H, W = x.shape
    x3 = x.reshape(N, C, -1)
    mean_in = x3.mean(-1, keepdims=True)
    var_in = x3.var(-1, keepdims=True, ddof=1)
    mean_ln = mean_in.mean(1, keepdims=True)
    temp = var_in + mean_in ** 2
    var_ln = temp.mean(1, keepdims=True) - mean_ln ** 2
    mw = jax.nn.softmax(mean_weight)
    vw = jax.nn.softmax(var_weight)
    mean = mw[0] * mean_in + mw[1] * mean_ln
    var = vw[0] * var_in + vw[1] * var_ln
    xn = (x3 - mean) / jnp.sqrt(var + EPS)
    xn = xn.reshape(N, C, H, W)
    return xn * weight.reshape(1, C, 1, 1) + bias.reshape(1, C, 1, 1)


if __name__ == "__main__":
    key = jax.random.PRNGKey(0)
    N, C, H, W = 2, 4, 16, 16
    x = jax.random.normal(key, (N, C, H, W), dtype=jnp.float32)

    # deterministic parameter init, matching nn.Module __init__ (last_gamma=False)
    weight = jnp.ones((C,), jnp.float32)         # self.weight = ones(1,C,1,1)
    bias = jnp.zeros((C,), jnp.float32)          # self.bias   = zeros(1,C,1,1)
    mean_weight = jnp.ones((2,), jnp.float32)    # using_bn=False -> 2 weights
    var_weight = jnp.ones((2,), jnp.float32)

    y = switch_norm(x, weight, bias, mean_weight, var_weight)
    jax.block_until_ready(y)

    y_ref = _reference(x, weight, bias, mean_weight, var_weight)
    assert jnp.allclose(y, y_ref, atol=1e-5, rtol=1e-5), "mismatch vs reference"
    print("KERNEL_OK")
</pallas_src>

<mosaic_0001>
module attributes {stable_mosaic.version = 11 : i64} {
  func.func @_switchnorm_kernel(%arg0: i32, %arg1: memref<2xf32, #tpu.memory_space<smem>>, %arg2: memref<2xf32, #tpu.memory_space<smem>>, %arg3: memref<1x4x1xf32, #tpu.memory_space<vmem>>, %arg4: memref<1x4x1xf32, #tpu.memory_space<vmem>>, %arg5: memref<1x4x256xf32, #tpu.memory_space<vmem>>, %arg6: memref<1x4x256xf32, #tpu.memory_space<vmem>>) attributes {dimension_semantics = [#tpu.dimension_semantics<parallel>], iteration_bounds = array<i64: 2>, scalar_prefetch = 0 : i64, scratch_operands = 0 : i64, tpu.core_type = #tpu.core_type<tc>, window_params = [{transform_indices = @transform_0, window_bounds = array<i64: 2>}, {transform_indices = @transform_1, window_bounds = array<i64: 2>}, {pipeline_mode = #tpu.pipeline_mode<synchronous>, transform_indices = @transform_2, window_bounds = array<i64: 1, 4, 1>}, {pipeline_mode = #tpu.pipeline_mode<synchronous>, transform_indices = @transform_3, window_bounds = array<i64: 1, 4, 1>}, {transform_indices = @transform_4, window_bounds = array<i64: 1, 4, 256>}, {transform_indices = @transform_5, window_bounds = array<i64: 1, 4, 256>}]} {
    %c0 = arith.constant 0 : index
    %c0_0 = arith.constant 0 : index
    %c0_1 = arith.constant 0 : index
    %0 = vector.load %arg5[%c0, %c0_0, %c0_1] : memref<1x4x256xf32, #tpu.memory_space<vmem>>, vector<1x4x256xf32>
    %cst = arith.constant dense<0.000000e+00> : vector<1x4xf32>
    %1 = vector.multi_reduction <add>, %0, %cst [2] : vector<1x4x256xf32> to vector<1x4xf32>
    %2 = vector.shape_cast %1 : vector<1x4xf32> to vector<1x4x1xf32>
    %3 = arith.mulf %0, %0 : vector<1x4x256xf32>
    %cst_2 = arith.constant dense<0.000000e+00> : vector<1x4xf32>
    %4 = vector.multi_reduction <add>, %3, %cst_2 [2] : vector<1x4x256xf32> to vector<1x4xf32>
    %5 = vector.shape_cast %4 : vector<1x4xf32> to vector<1x4x1xf32>
    %cst_3 = arith.constant 3.906250e-03 : f32
    %6 = vector.broadcast %cst_3 : f32 to vector<1x4x1xf32>
    %7 = arith.mulf %2, %6 : vector<1x4x1xf32>
    %8 = arith.mulf %2, %7 : vector<1x4x1xf32>
    %9 = arith.subf %5, %8 : vector<1x4x1xf32>
    %cst_4 = arith.constant 2.550000e+02 : f32
    %10 = vector.broadcast %cst_4 : f32 to vector<1x4x1xf32>
    %11 = arith.divf %9, %10 : vector<1x4x1xf32>
    %cst_5 = arith.constant dense<0.000000e+00> : vector<1x1xf32>
    %12 = vector.multi_reduction <add>, %7, %cst_5 [1] : vector<1x4x1xf32> to vector<1x1xf32>
    %13 = vector.shape_cast %12 : vector<1x1xf32> to vector<1x1x1xf32>
    %cst_6 = arith.constant 4.000000e+00 : f32
    %14 = vector.broadcast %cst_6 : f32 to vector<1x1x1xf32>
    %15 = arith.divf %13, %14 : vector<1x1x1xf32>
    %16 = arith.mulf %7, %7 : vector<1x4x1xf32>
    %17 = arith.addf %11, %16 : vector<1x4x1xf32>
    %cst_7 = arith.constant dense<0.000000e+00> : vector<1x1xf32>
    %18 = vector.multi_reduction <add>, %17, %cst_7 [1] : vector<1x4x1xf32> to vector<1x1xf32>
    %19 = vector.shape_cast %18 : vector<1x1xf32> to vector<1x1x1xf32>
    %cst_8 = arith.constant 4.000000e+00 : f32
    %20 = vector.broadcast %cst_8 : f32 to vector<1x1x1xf32>
    %21 = arith.divf %19, %20 : vector<1x1x1xf32>
    %22 = arith.mulf %15, %15 : vector<1x1x1xf32>
    %23 = arith.subf %21, %22 : vector<1x1x1xf32>
    %c0_9 = arith.constant 0 : index
    %24 = memref.load %arg1[%c0_9] : memref<2xf32, #tpu.memory_space<smem>>
    %c1 = arith.constant 1 : index
    %25 = memref.load %arg1[%c1] : memref<2xf32, #tpu.memory_space<smem>>
    %c0_10 = arith.constant 0 : index
    %26 = memref.load %arg2[%c0_10] : memref<2xf32, #tpu.memory_space<smem>>
    %c1_11 = arith.constant 1 : index
    %27 = memref.load %arg2[%c1_11] : memref<2xf32, #tpu.memory_space<smem>>
    %28 = vector.broadcast %24 : f32 to vector<1x4x1xf32>
    %29 = arith.mulf %28, %7 : vector<1x4x1xf32>
    %30 = vector.broadcast %25 : f32 to vector<1x1x1xf32>
    %31 = arith.mulf %30, %15 : vector<1x1x1xf32>
    %32 = vector.broadcast %31 : vector<1x1x1xf32> to vector<1x4x1xf32>
    %33 = arith.addf %29, %32 : vector<1x4x1xf32>
    %34 = vector.broadcast %26 : f32 to vector<1x4x1xf32>
    %35 = arith.mulf %34, %11 : vector<1x4x1xf32>
    %36 = vector.broadcast %27 : f32 to vector<1x1x1xf32>
    %37 = arith.mulf %36, %23 : vector<1x1x1xf32>
    %38 = vector.broadcast %37 : vector<1x1x1xf32> to vector<1x4x1xf32>
    %39 = arith.addf %35, %38 : vector<1x4x1xf32>
    %cst_12 = arith.constant 9.99999974E-6 : f32
    %40 = vector.broadcast %cst_12 : f32 to vector<1x4x1xf32>
    %41 = arith.addf %39, %40 : vector<1x4x1xf32>
    %42 = math.rsqrt %41 : vector<1x4x1xf32>
    %c0_13 = arith.constant 0 : index
    %c0_14 = arith.constant 0 : index
    %c0_15 = arith.constant 0 : index
    %43 = vector.load %arg3[%c0_13, %c0_14, %c0_15] : memref<1x4x1xf32, #tpu.memory_space<vmem>>, vector<1x4x1xf32>
    %44 = arith.mulf %43, %42 : vector<1x4x1xf32>
    %c0_16 = arith.constant 0 : index
    %c0_17 = arith.constant 0 : index
    %c0_18 = arith.constant 0 : index
    %45 = vector.load %arg4[%c0_16, %c0_17, %c0_18] : memref<1x4x1xf32, #tpu.memory_space<vmem>>, vector<1x4x1xf32>
    %46 = arith.mulf %33, %44 : vector<1x4x1xf32>
    %47 = arith.subf %45, %46 : vector<1x4x1xf32>
    %48 = vector.broadcast %44 : vector<1x4x1xf32> to vector<1x4x256xf32>
    %49 = arith.mulf %0, %48 : vector<1x4x256xf32>
    %50 = vector.broadcast %47 : vector<1x4x1xf32> to vector<1x4x256xf32>
    %51 = arith.addf %49, %50 : vector<1x4x256xf32>
    %c0_19 = arith.constant 0 : index
    %c0_20 = arith.constant 0 : index
    %c0_21 = arith.constant 0 : index
    %52 = vector.load %arg6[%c0_19, %c0_20, %c0_21] : memref<1x4x256xf32, #tpu.memory_space<vmem>>, vector<1x4x256xf32>
    tpu.vector_store %arg6[%c0_19, %c0_20, %c0_21], %51 {strides = array<i32>} : memref<1x4x256xf32, #tpu.memory_space<vmem>>, vector<1x4x256xf32>,
    return
  }
  func.func @transform_0(%arg0: i32) -> i32 {
    %c0_i32 = arith.constant 0 : i32
    %c0_i32_0 = arith.constant 0 : i32
    return %c0_i32 : i32
  }
  func.func @transform_1(%arg0: i32) -> i32 {
    %c0_i32 = arith.constant 0 : i32
    %c0_i32_0 = arith.constant 0 : i32
    return %c0_i32 : i32
  }
  func.func @transform_2(%arg0: i32) -> (i32, i32, i32) {
    %c0_i32 = arith.constant 0 : i32
    %c0_i32_0 = arith.constant 0 : i32
    %c0_i32_1 = arith.constant 0 : i32
    %c0_i32_2 = arith.constant 0 : i32
    return %c0_i32, %c0_i32_0, %c0_i32_1 : i32, i32, i32
  }
  func.func @transform_3(%arg0: i32) -> (i32, i32, i32) {
    %c0_i32 = arith.constant 0 : i32
    %c0_i32_0 = arith.constant 0 : i32
    %c0_i32_1 = arith.constant 0 : i32
    %c0_i32_2 = arith.constant 0 : i32
    return %c0_i32, %c0_i32_0, %c0_i32_1 : i32, i32, i32
  }
  func.func @transform_4(%arg0: i32) -> (i32, i32, i32) {
    %c0_i32 = arith.constant 0 : i32
    %c0_i32_0 = arith.constant 0 : i32
    %c0_i32_1 = arith.constant 0 : i32
    return %arg0, %c0_i32, %c0_i32_0 : i32, i32, i32
  }
  func.func @transform_5(%arg0: i32) -> (i32, i32, i32) {
    %c0_i32 = arith.constant 0 : i32
    %c0_i32_0 = arith.constant 0 : i32
    %c0_i32_1 = arith.constant 0 : i32
    return %arg0, %c0_i32, %c0_i32_0 : i32, i32, i32
  }
}

</mosaic_0001>

<bundles_post_ra>
// kernel: tpu_custom_call.1
= control target key start
LH: loop header
LB: loop body
LE: loop exit
PB: predicated region body
PF: predicated region fallthrough
CT: control target
= control target key end

     0   :  { %10 = vsyncpa [#allocation4], 0  ;;  %s818_s0 = inlined_call_operand.vmem [shape: f32[2], index: 0, kind: input, shape index: {}]   ;;  %s819_s1 = inlined_call_operand.vmem [shape: f32[2], index: 1, kind: input, shape index: {}]   ;;  %s820_s2 = inlined_call_operand.vmem [shape: f32[1,4,1], index: 2, kind: input, shape index: {}]   ;;  %s821_s3 = inlined_call_operand.vmem [shape: f32[1,4,1], index: 3, kind: input, shape index: {}]   ;;  %s822_s4 = inlined_call_operand.vmem [shape: f32[2,4,256], index: 4, kind: input, shape index: {}]   ;;  %s823_s5 = inlined_call_operand.hbm [shape: f32[2,4,256], index: 5, kind: output, shape index: {}]  }
   0x1   :  { %11 = vsyncpa [#allocation6], 0 }
   0x2   :  { %12 = vsyncpa [#allocation3], 0 }
   0x3   :  { %14 = vsyncpa [#allocation3 + $0x1], 0  ;;  %s663_s18 = smov 0   ;;  %s665_s19 = smov 0  }
   0x4   :  { %s667_s20 = smov 0   ;;  %s669_s21 = smov 0  }
   0x5 LB: > { %s684_s22 = sadd.s32 4294967295, %s626_s21   ;;  %s439_s23 = sadd.s32 4294967294, %s626_s21   ;;  %s626_s21 = sphi %s669_s21, %s841_s21   ;;  %s622_s20 = sphi %s667_s20, %s840_s20   ;;  %s618_s19 = sphi %s665_s19, %s839_s19   ;;  %s614_s18 = sphi %s663_s18, %s838_s18  }
   0x6   : > { %s688_s24 = sadd.s32 1, %s626_s21   ;;  %s137_s25 = sadd.s32 1, %s622_s20 }
   0x7   : > { %s134_s26 = ssub.s32 %s626_s21, %s688_s24  ;;  %p147_p0 = scmp.ne.s32.totalorder %s622_s20, %s618_s19 }
   0x8   : > { %p135_p1 = scmp.eq.s32.totalorder %s134_s26, 0  ;;  %p148_p2 = scmp.eq.s32.totalorder %s684_s22, 1 }
   0x9   : > { %p153_p3 = scmp.ne.s32.totalorder %s618_s19, %s614_s18  ;;  %p154_p4 = scmp.eq.s32.totalorder %s439_s23, 1 }
   0xa   : > { %s699_s27 = scalar_select %p135_p1, %s622_s20, %s137_s25  }
   0xb   : > { %p701_p5 = por %p148_p2, %p147_p0  ;;  %p705_p6 = por %p154_p4, %p153_p3 }
   0xc   : > { %p440_p7 = scmp.ge.s32.totalorder %s626_s21, 1  ;;  %p161_p8 = scmp.lt.s32.totalorder %s626_s21, 3 }
   0xd   : > { %s827_s28 = scalar_select %p701_p5, 1, 0 }
   0xe   : > { %s828_s29 = scalar_select %p705_p6, 1, 0 }
   0xf   : > { %p824_p9 = scmp.eq.s32.totalorder %s684_s22, 0  ;;  %p712_p10 = pnand %p440_p7, %p161_p8 }
  0x10   : > { %s174_s8 = sshll.u32 %s818_s0, 4  ;;  %s185_s11 = sshll.u32 %s819_s1, 4  ;;  %s175_s8 = int_to_ptr.vmem [resolvable:$true] %s174_s8  ;;  %s186_s11 = int_to_ptr.vmem [resolvable:$true] %s185_s11 }
  0x11   : > { %s829_s30 = scalar_select %p712_p10, 1, 0 }
  0x12   : > { %p469_p11 = pneg %p712_p10  ;;  %s526_s13 = scalar_lea.vmem %s175_s8, 16 }
  0x13   : > { %p527_p13 = scmp.ne.s32.totalorder %s175_s8, %s526_s13  ;;  %p534_p3 = scmp.lt.s32.totalorder %s175_s8, %s175_s8 }
  0x14   : > { %p726_p12 = pnand %p824_p9, %p469_p11  ;;  %p535_p4 = scmp.lt.s32.totalorder %s526_s13, %s526_s13 }
  0x16   : > { %p528_p0 = pneg %p726_p12  ;;  %p536_p7 = por %p535_p4, %p534_p3 }
  0x18   : > { %p529_p1 = pnand %p528_p0, %p527_p13 }
  0x1a   : > { %p530_p2 = pneg %p529_p1 }
  0x1c   : > { %p537_p8 = pnand %p536_p7, %p530_p2 }
  0x1e   : > { %540 = shalt.err (!%p537_p8)
}
  0x1f   : > { %s628_s14 = smov [#allocation2]   ;;  %s541_s15 = scalar_lea.vmem %s186_s11, 16 }
  0x20   : > { %472 = dma.vmem_to_smem (!%p726_p12), %s175_s8, 16, %s628_s14, [#allocation4]  }
  0x21   : > { %p542_p11 = scmp.ne.s32.totalorder %s186_s11, %s541_s15  ;;  %p549_p5 = scmp.lt.s32.totalorder %s186_s11, %s186_s11 }
  0x22   : > { %p550_p10 = scmp.lt.s32.totalorder %s541_s15, %s541_s15 }
  0x23   : > { %p544_p9 = pnand %p542_p11, %p528_p0 }
  0x24   : > { %p551_p13 = por %p550_p10, %p549_p5 }
  0x25   : > { %p545_p6 = pneg %p544_p9 }
  0x27   : > { %p552_p1 = pnand %p551_p13, %p545_p6 }
  0x29   : > { %555 = shalt.err (!%p552_p1)
}
  0x2a   : > { %s629_s16 = smov [#allocation5]   ;;  %p831_p2 = scmp.ne.s32.totalorder %s829_s30, 0 }
  0x2b   : > { %475 = dma.vmem_to_smem (!%p726_p12), %s186_s11, 16, %s629_s16, [#allocation6]  }
  0x2c   : > { %212 = sbr.rel (%p831_p2) target bundleno = 408 (0x198), region = 40  ;;  %p832_p3 = scmp.eq.s32.totalorder (!%p831_p2), %s684_s22, 0 }
  0x33   : > { %601 = dma.done.wait (%p832_p3), [#allocation4], 16   ;;  %p833_p4 = pmov %p832_p3 }
  0x34   : > { %p834_p9 = pmov %p832_p3 }
  0x35   : > { %603 = vsyncadd (%p833_p4), [#allocation4], 4294967280 }
  0x36   : > { %605 = dma.done.wait (%p834_p9), [#allocation6], 16   ;;  %p835_p5 = pmov %p832_p3 }
  0x38   : > { %607 = vsyncadd (%p835_p5), [#allocation6], 4294967280 }
  0x39   : > { %222 = sfence }
  0x3a   : > { %p245_p6 = scmp.lt.s32.totalorder %s684_s22, 1  ;;  %vm254_vm0 = vcmask 1043456   ;;  %v630_v10 = vmov 0   ;;  %s297_s6 = sld [smem:[#allocation5]]  ;;  %v311_v46 = vld [vmem:[%s820_s2] sm:$0xf]  ;;  %v323_v56 = vlaneseq }
  0x3b   : > { %521 = vset.pattern.permute.xlu1 %v630_v10  ;;  %522 = vset.pattern.permute.xlu0 %v630_v10  ;;  %s451_s7 = sld [smem:[#allocation5 + $0x1]]  ;;  %s295_s9 = sld [smem:[#allocation2]]  ;;  %v313_v51 = vld [vmem:[%s821_s3] sm:$0xf]  ;;  %v631_v54 = vmov 839922192  }
  0x3c   : > { %s246_s17 = scalar_select %p245_p6, %s684_s22, 1  ;;  %v321_v55 = vunpack.c.l.s4 %v631_v54  ;;  %v324_v58 = vshrl.u32 %v323_v56, 7 }
  0x3d   : > { %s450_s8 = sld [smem:[#allocation2 + $0x1]]  ;;  %s242_s14 = sand.u32 1, %s618_s19  }
  0x3e   : > { %s457_s23 = sshll.u32 %s246_s17, 3  ;;  %v322_v57 = vunpack.c.0.s8 %v321_v55  ;;  %s447_s15 = sshll.u32 %s242_s14, 3 }
  0x3f   : > { %s249_s30 = scalar_lea.vmem %s822_s4, %s457_s23  ;;  %s458_s16 = sshll.u32 %s684_s22, 7 }
  0x40   : > { %v751_v0 = vld [vmem:[%s249_s30] sm:$0xff]  ;;  %v304_v36 = vstv %s297_s6  ;;  %v325_v59 = vsub.s32 %v322_v57, %v324_v58  ;;  %s244_s17 = scalar_lea.vmem [#allocation7], %s447_s15  ;;  %s776_s30 = scalar_lea.hbm %s823_s5, %s458_s16 }
  0x41   : > { %v252_v1 = vcombine.high %v751_v0, %v751_v0  ;;  %v255_v2 = vsel %vm254_vm0, %v751_v0, 0.0  ;;  %v260_v3 = vmul.f32 %v751_v0, %v751_v0  ;;  %v306_v37 = vstv %s451_s7  ;;  %s358_s23 = sshll.u32 %s244_s17, 4  ;;  %s344_s6 = scalar_lea.sflag [#allocation3], %s242_s14  ;;  %s778_s23 = int_to_ptr.vmem [resolvable:$true] %s358_s23 }
  0x42   : > { %v299_v44 = vstv %s295_s9  ;;  %s556_s7 = scalar_lea.vmem %s778_s23, 128  ;;  %p836_p12 = scmp.ne.s32.totalorder %s827_s28, 0 }
  0x43   : > { %v256_v4 = vsel %vm254_vm0, %v252_v1, 0.0  ;;  %v262_v5 = vcombine.high %v260_v3, %v260_v3  ;;  %v264_v6 = vsel %vm254_vm0, %v260_v3, 0.0  ;;  %v301_v43 = vstv %s450_s8  ;;  %p557_p10 = scmp.ne.s32.totalorder %s778_s23, %s556_s7  ;;  %s632_s22 = smov [#allocation7]  }
  0x44   : > { %v257_v7 = vadd.f32 %v256_v4, %v255_v2  ;;  %s560_s8 = sshll.u32 %s632_s22, 4  ;;  %s561_s8 = int_to_ptr.vmem [resolvable:$false] %s560_s8 }
  0x45   : > { %v265_v8 = vsel %vm254_vm0, %v262_v5, 0.0  ;;  %p558_p0 = pnand %p557_p10, %p836_p12  ;;  %s562_s9 = scalar_lea.vmem %s561_s8, 256 }
  0x46   : > { %258 = vadd.xlane.f32.xlu0 %v257_v7  ;;  %v266_v9 = vadd.f32 %v265_v8, %v264_v6  ;;  %p563_p8 = scmp.lt.s32.totalorder %s778_s23, %s561_s8  ;;  %p564_p11 = scmp.lt.s32.totalorder %s562_s9, %s556_s7 }
  0x47   : > { %p559_p7 = pneg %p558_p0 }
  0x48   : > { %p565_p13 = por %p564_p11, %p563_p8 }
  0x4a   : > { %267 = vadd.xlane.f32.xlu0 %v266_v9  ;;  %p566_p1 = pnand %p565_p13, %p559_p7 }
  0xd3   : > { %v259_v11 = vpop.xlane.xlu0 %258 }
  0xd4   : > { %v269_v12 = vmul.f32 0.00390625, %v259_v11 }
  0xd6   : > { %v270_v13 = vmul.f32 %v269_v12, %v259_v11  ;;  %v274_v14 = vsel %vm254_vm0, %v269_v12, 0.0  ;;  %v283_v19 = vmul.f32 %v269_v12, %v269_v12  ;;  %v300_v47 = vmul.f32 %v299_v44, %v269_v12 }
  0xd7   : > { %v275_v15 = vrot.slane %v274_v14, 4  ;;  %v268_v16 = vpop.xlane.xlu0 %267 }
  0xd8   : > { %v271_v17 = vsub.f32 %v268_v16, %v270_v13 }
  0xd9   : > { %v276_v18 = vadd.f32 %v275_v15, %v274_v14 }
  0xda   : > { %v273_v20 = vmul.f32 0.003921569, %v271_v17 }
  0xdb   : > { %v277_v21 = vrot.slane %v276_v18, 2 }
  0xdc   : > { %v284_v22 = vadd.f32 %v283_v19, %v273_v20  ;;  %v305_v39 = vmul.f32 %v304_v36, %v273_v20 }
  0xdd   : > { %v278_v23 = vadd.f32 %v277_v21, %v276_v18 }
  0xde   : > { %v285_v24 = vsel %vm254_vm0, %v284_v22, 0.0 }
  0xdf   : > { %v279_v25 = vrot.slane %v278_v23, 1  ;;  %v286_v26 = vrot.slane %v285_v24, 4 }
  0xe1   : > { %v287_v27 = vadd.f32 %v286_v26, %v285_v24  ;;  %v280_v28 = vadd.f32 %v279_v25, %v278_v23 }
  0xe3   : > { %v288_v29 = vrot.slane %v287_v27, 2  ;;  %v282_v31 = vmul.f32 0.25, %v280_v28 }
  0xe5   : > { %v289_v30 = vadd.f32 %v288_v29, %v287_v27  ;;  %v293_v34 = vmul.f32 %v282_v31, %v282_v31  ;;  %v302_v45 = vmul.f32 %v301_v43, %v282_v31 }
  0xe7   : > { %v290_v32 = vrot.slane %v289_v30, 1  ;;  %v303_v49 = vadd.f32 %v302_v45, %v300_v47 }
  0xe9   : > { %v291_v33 = vadd.f32 %v290_v32, %v289_v30 }
  0xeb   : > { %v292_v35 = vmul.f32 0.25, %v291_v33 }
  0xed   : > { %v294_v38 = vsub.f32 %v292_v35, %v293_v34 }
  0xef   : > { %v307_v40 = vmul.f32 %v306_v37, %v294_v38 }
  0xf1   : > { %v308_v41 = vadd.f32 %v307_v40, %v305_v39 }
  0xf3   : > { %v309_v42 = vadd.f32 1e-05, %v308_v41 }
  0xf5   : > { %524 = vrsqrt.f32 %v309_v42 }
  0xff   : > { %v525_v48 = vpop.eup %524 }
 0x100   : > { %v312_v50 = vmul.f32 %v525_v48, %v311_v46 }
 0x102   : > { %318 = vperm.xlu1 %521, %v312_v50   ;;  %v314_v52 = vmul.f32 %v312_v50, %v303_v49 }
 0x104   : > { %v315_v53 = vsub.f32 %v313_v51, %v314_v52 }
 0x106   : > { %331 = vperm.xlu1 %521, %v315_v53  }
 0x181   : > { %v319_v60 = vpop.permute.xlu1 %318 }
 0x182   : > { %v326_v61 = vrot.slane %v319_v60, %v325_v59 }
 0x184   : > { %v328_v63 = vmul.f32 %v326_v61, %v751_v0 }
 0x185   : > { %v332_v62 = vpop.permute.xlu1 %331 }
 0x186   : > { %v339_v1 = vrot.slane %v332_v62, %v325_v59 }
 0x188   : > { %v341_v2 = vadd.f32 %v339_v1, %v328_v63 }
 0x18a   : > { %342 = vst [vmem:[%s244_s17] sm:$0xff] %v341_v2 }
 0x18b   : > { %569 = shalt.err (!%p566_p1)
}
 0x18c   : > { %s570_s10 = scalar_lea.hbm %s776_s30, 128  ;;  %s574_s13 = scalar_lea.hbm %s823_s5, 256 }
 0x18d   : > { %p571_p2 = scmp.ne.s32.totalorder %s776_s30, %s570_s10  ;;  %p575_p9 = scmp.lt.u32.totalorder %s776_s30, %s823_s5 }
 0x18e   : > { %p576_p5 = scmp.lt.u32.totalorder %s574_s13, %s570_s10  ;;  %p578_p10 = scmp.lt.u32.totalorder %s570_s10, %s776_s30 }
 0x18f   : > { %p572_p3 = pnand %p571_p2, %p836_p12 }
 0x190   : > { %p577_p6 = por %p576_p5, %p575_p9 }
 0x191   : > { %p573_p4 = pneg %p572_p3 }
 0x192   : > { %p579_p0 = por %p578_p10, %p577_p6 }
 0x194   : > { %p580_p7 = pnand %p579_p0, %p573_p4 }
 0x196   : > { %583 = shalt.err (!%p580_p7)
}
 0x197   : > { %467 = dma.vmem_to_hbm [thread:$0]  (%p836_p12), %s778_s23, 128, %s776_s30, %s344_s6  }
 0x198 PF: > { %p484_p8 = scmp.ge.s32.totalorder %s626_s21, 2  ;;  %s370_s16 = sand.u32 1, %s614_s18  }
 0x199   : > { %p837_p11 = scmp.ne.s32.totalorder %s828_s29, 0  ;;  %s371_s17 = scalar_lea.sflag [#allocation3], %s370_s16 }
 0x19b   : > { %p477_p13 = pnand %p484_p8, %p837_p11 }
 0x19d   : > { %609 = dma.done.wait (!%p477_p13), %s371_s17, 128  }
 0x19e   : > { %611 = vsyncadd (!%p477_p13), %s371_s17, 4294967168  ;;  %p17_p1 = scmp.ge.s32.totalorder %s688_s24, 4   ;;  %s838_s18 = smov %s618_s19 }
 0x19f   : > { %s839_s19 = smov %s622_s20  ;;  %s840_s20 = smov %s699_s27 }
 0x1a0   : > { %s841_s21 = smov %s688_s24  ;;  %19 = sbr.rel (!%p17_p1) target bundleno = 5 (0x5), region = 84 }
 0x1a7   :  { %376 = vsyncpa [#allocation3], 1 }
 0x1a8   :  { %378 = vsyncpa [#allocation3 + $0x1], 1 }
 0x1a9   :  { %379 = vsyncpa [#allocation4], 1 }
 0x1aa   :  { %381 = vsyncpa [#allocation4 + $0x1], 1 }
 0x1ab   :  { %382 = vsyncpa [#allocation6], 1 }

</bundles_post_ra>
